<compile_context>
chip_gen: v7x
topology: tpu7x:2x2x1
jax: 0.10.0
libtpu: 0.0.40
codegen_flags: <defaults>
</compile_context>

<pallas_src>
import jax
import jax.numpy as jnp
from jax.experimental import pallas as pl
from jax.experimental.pallas import tpu as pltpu

_MIB = 1024 * 1024


def _copy_kernel(x_ref, o_ref):
    # Straight full-tile copy of the current (tile_rows, lanes) block.
    o_ref[...] = x_ref[...]


def _generation_budgets():
    """(block_budget_bytes, vmem_limit_bytes) tuned per TPU generation."""
    kind = ""
    try:
        kind = jax.devices()[0].device_kind.lower()
    except Exception:
        pass
    if "v7" in kind:
        # 64 MiB physical VMEM: keep scoped limit <= ~48 MiB so 4x
        # double-buffered 8 MiB blocks still fit.
        return 8 * _MIB, 48 * _MIB
    if "v6" in kind or "v5p" in kind:
        # 128 MiB physical VMEM: bigger blocks cut grid-step overhead.
        return 8 * _MIB, 64 * _MIB
    if "v5" in kind:
        # v5e: 2 MiB DMAs already hide per-step overhead; HBM BW is the limit.
        return 2 * _MIB, 32 * _MIB
    # Unknown generation: conservative settings that fit everywhere.
    return 4 * _MIB, 32 * _MIB


def _pick_lanes(total, last):
    """Widest lane count (multiple of 128) that divides the flat size."""
    cands = {4096, 2048, 1024, 512, 256, 128}
    if last % 128 == 0 and 128 <= last <= 8192:
        cands.add(last)
    for lanes in sorted(cands, reverse=True):
        if total % lanes == 0:
            return lanes
    return None


def _as_lane_dense_2d(x):
    """Free (reshape-only) 2-D view of x.  Never pads, slices, or copies."""
    total = int(x.size)
    last = int(x.shape[-1]) if x.ndim >= 1 else 1
    lanes = _pick_lanes(total, last)
    if lanes is not None:
        return x.reshape(total // lanes, lanes)
    # Awkward sizes (last dim not 128-aligned): natural (rows, last) view.
    # Full-extent last dim is always a legal block dim; stores are masked but
    # no padding or extra HBM traffic is needed.
    if x.ndim >= 2:
        return x.reshape(-1, last)
    return x.reshape(1, max(total, 1))


def _pallas_identity_copy(x):
    """Materialize a copy of `x` through a lane-dense, tiled Pallas kernel."""
    if x.size == 0:
        return x

    x2d = _as_lane_dense_2d(x)
    rows, lanes = int(x2d.shape[0]), int(x2d.shape[1])
    itemsize = jnp.dtype(x.dtype).itemsize
    block_budget, vmem_limit = _generation_budgets()

    if rows <= 32:
        # Full-extent row block is always legal (even if not 8-aligned).
        tile_rows = rows
    else:
        budget_rows = block_budget // (lanes * itemsize)
        # Multiple of 32 -> safe sublane packing for f32/bf16/int8 alike.
        tile_rows = max(32, (budget_rows // 32) * 32)
        tile_rows = min(tile_rows, rows)  # either rows (full dim) or 32-mult

    # Keep at least 2 grid steps on tensors with enough rows so the
    # "parallel" axis can shard across both v7x TensorCores.
    if rows >= 64 and pl.cdiv(rows, tile_rows) < 2:
        tile_rows = ((-(-rows // 2) + 31) // 32) * 32  # round_up_32(ceil(r/2))

    grid = (pl.cdiv(rows, tile_rows),)  # last block may be partial (clipped)

    out2d = pl.pallas_call(
        _copy_kernel,
        out_shape=jax.ShapeDtypeStruct((rows, lanes), x.dtype),
        grid_spec=pltpu.PrefetchScalarGridSpec(
            num_scalar_prefetch=0,
            grid=grid,
            in_specs=[pl.BlockSpec((tile_rows, lanes), lambda r: (r, 0))],
            out_specs=pl.BlockSpec((tile_rows, lanes), lambda r: (r, 0)),
        ),
        compiler_params=pltpu.CompilerParams(
            dimension_semantics=("parallel",),
            vmem_limit_bytes=vmem_limit,
        ),
    )(x2d)

    # No padding was ever added, so this reshape is free.
    return out2d.reshape(x.shape)


def concat_pooling(x, mask=None, materialize=False):
    """Pallas equivalent of ConcatPooling.forward(x, mask) -> x.

    x: (batch, seq, embed). `mask` is accepted for API parity but unused,
    exactly matching the PyTorch module.

    Default path: return `x` (identity -> no kernel, no HBM traffic).  Note
    this aliases the input buffer; callers that need a fresh HBM buffer pass
    `materialize=True` to run the tiled Pallas copy.  (For shapes where no
    fusion is needed, `jnp.copy(x)` is an equally good alternative.)
    """
    if not materialize:
        return x
    return _pallas_identity_copy(x)


if __name__ == "__main__":
    key = jax.random.PRNGKey(0)
    batch, seq, embed = 2, 8, 32
    x = jax.random.normal(key, (batch, seq, embed), dtype=jnp.float32)

    # Fast (recommended) identity path — no kernel launched.
    out_fast = concat_pooling(x)
    jax.block_until_ready(out_fast)
    assert out_fast.shape == x.shape and out_fast.dtype == x.dtype
    assert bool(jnp.array_equal(out_fast, x)), "identity fast path mismatch"

    # Materializing Pallas copy path — exercises the kernel (single block).
    out_copy = concat_pooling(x, materialize=True)
    jax.block_until_ready(out_copy)
    assert out_copy.shape == x.shape and out_copy.dtype == x.dtype
    assert bool(jnp.array_equal(out_copy, x)), "identity copy kernel mismatch"

    # Larger bf16 case: multi-step grid with a partial last block.
    x2 = jax.random.normal(jax.random.PRNGKey(1), (8, 1000, 256), jnp.float32)
    x2 = x2.astype(jnp.bfloat16)
    out2 = concat_pooling(x2, materialize=True)
    jax.block_until_ready(out2)
    assert out2.shape == x2.shape and out2.dtype == x2.dtype
    assert bool(jnp.array_equal(out2, x2)), "multi-block copy mismatch"

    print("KERNEL_OK")
</pallas_src>

<mosaic_0001>
module attributes {stable_mosaic.version = 11 : i64} {
  func.func @_copy_kernel(%arg0: i32, %arg1: memref<1x512xf32, #tpu.memory_space<vmem>>, %arg2: memref<1x512xf32, #tpu.memory_space<vmem>>) attributes {dimension_semantics = [#tpu.dimension_semantics<parallel>], iteration_bounds = array<i64: 1>, scalar_prefetch = 0 : i64, scratch_operands = 0 : i64, tpu.core_type = #tpu.core_type<tc>, window_params = [{transform_indices = @transform_0, window_bounds = array<i64: 1, 512>}, {transform_indices = @transform_1, window_bounds = array<i64: 1, 512>}]} {
    %c0 = arith.constant 0 : index
    %c0_0 = arith.constant 0 : index
    %0 = vector.load %arg1[%c0, %c0_0] : memref<1x512xf32, #tpu.memory_space<vmem>>, vector<1x512xf32>
    %c0_1 = arith.constant 0 : index
    %c0_2 = arith.constant 0 : index
    %1 = vector.load %arg2[%c0_1, %c0_2] : memref<1x512xf32, #tpu.memory_space<vmem>>, vector<1x512xf32>
    tpu.vector_store %arg2[%c0_1, %c0_2], %0 {strides = array<i32>} : memref<1x512xf32, #tpu.memory_space<vmem>>, vector<1x512xf32>,
    return
  }
  func.func @transform_0(%arg0: i32) -> (i32, i32) {
    %c0_i32 = arith.constant 0 : i32
    %c0_i32_0 = arith.constant 0 : i32
    return %arg0, %c0_i32 : i32, i32
  }
  func.func @transform_1(%arg0: i32) -> (i32, i32) {
    %c0_i32 = arith.constant 0 : i32
    %c0_i32_0 = arith.constant 0 : i32
    return %arg0, %c0_i32 : i32, i32
  }
}

</mosaic_0001>

<bundles_post_ra>
// kernel: tpu_custom_call.1
= control target key start
LH: loop header
LB: loop body
LE: loop exit
PB: predicated region body
PF: predicated region fallthrough
CT: control target
= control target key end

     0   :  { %6 = vsyncpa [#allocation3], 0  ;;  %s128_s0 = inlined_call_operand.hbm [shape: f32[1,512], index: 0, kind: input, shape index: {}]   ;;  %s129_s1 = inlined_call_operand.hbm [shape: f32[1,512], index: 1, kind: output, shape index: {}]  }
   0x1   :  { %7 = vsyncpa [#allocation4], 0  ;;  %s92_s6 = smov [#allocation2]   ;;  %s44_s10 = scalar_lea.hbm %s128_s0, 64 }
   0x2   :  { %s14_s7 = sshll.u32 %s92_s6, 4  ;;  %p45_p0 = scmp.ne.s32.totalorder %s128_s0, %s44_s10  ;;  %s15_s7 = int_to_ptr.vmem [resolvable:$true] %s14_s7 }
   0x3   :  { %p48_p1 = scmp.lt.u32.totalorder %s44_s10, %s128_s0 }
   0x5   :  { %p50_p2 = pnand %p48_p1, %p45_p0 }
   0x7   :  { %53 = shalt.err (!%p50_p2)
}
   0x8   :  { %s54_s15 = scalar_lea.vmem %s15_s7, 64  ;;  %p59_p4 = scmp.lt.s32.totalorder %s15_s7, %s15_s7 }
   0x9   :  { %p55_p3 = scmp.ne.s32.totalorder %s15_s7, %s54_s15  ;;  %p60_p5 = scmp.lt.s32.totalorder %s54_s15, %s54_s15 }
   0xb   :  { %p61_p6 = por %p60_p5, %p59_p4 }
   0xd   :  { %p62_p7 = pnand %p61_p6, %p55_p3 }
   0xf   :  { %65 = shalt.err (!%p62_p7)
}
  0x10   :  { %17 = dma.hbm_to_vmem [thread:$0]  %s128_s0, 64, %s15_s7, [#allocation3]  }
  0x11   :  { %88 = dma.done.wait [#allocation3], 64  }
  0x12   :  { %89 = vsyncadd [#allocation3], 4294967232  ;;  %v22_v0 = vlaneseq  ;;  %s93_s18 = smov [#allocation5]   ;;  %v21_v1 = vld [vmem:[#allocation2] sm:$0xf] }
  0x13   :  { %s33_s19 = sshll.u32 %s93_s18, 4  ;;  %s34_s19 = int_to_ptr.vmem [resolvable:$true] %s33_s19 }
  0x14   :  { %vm24_vm0 = vcmp.lt.s32.totalorder %v22_v0, 512  ;;  %s66_s20 = scalar_lea.vmem %s34_s19, 64  ;;  %p71_p9 = scmp.lt.s32.totalorder %s34_s19, %s34_s19 }
  0x15   :  { %26 = vst.msk [vmem:[#allocation5] sm:$0xf] %vm24_vm0, %v21_v1  ;;  %p67_p8 = scmp.ne.s32.totalorder %s34_s19, %s66_s20  ;;  %p72_p10 = scmp.lt.s32.totalorder %s66_s20, %s66_s20 }
  0x17   :  { %p73_p11 = por %p72_p10, %p71_p9 }
  0x19   :  { %p74_p12 = pnand %p73_p11, %p67_p8 }
  0x1b   :  { %77 = shalt.err (!%p74_p12)
}
  0x1c   :  { %s78_s0 = scalar_lea.hbm %s129_s1, 64 }
  0x1d   :  { %p79_p13 = scmp.ne.s32.totalorder %s129_s1, %s78_s0  ;;  %p82_p0 = scmp.lt.u32.totalorder %s78_s0, %s129_s1 }
  0x1f   :  { %p84_p1 = pnand %p82_p0, %p79_p13 }
  0x21   :  { %87 = shalt.err (!%p84_p1)
}
  0x22   :  { %36 = dma.vmem_to_hbm [thread:$0]  %s34_s19, 64, %s129_s1, [#allocation4]  }
  0x23   :  { %90 = dma.done.wait [#allocation4], 64  }
  0x24   :  { %91 = vsyncadd [#allocation4], 4294967232 }
  0x25   :  { %40 = vsyncpa [#allocation3], 1 }
  0x26   :  { %41 = vsyncpa [#allocation4], 1 }

</bundles_post_ra>
